<compile_context>
chip_gen: v7x
topology: tpu7x:2x2x1
jax: 0.10.0
libtpu: 0.0.40
codegen_flags: <defaults>
</compile_context>

<pallas_src>
import functools

import jax
import jax.numpy as jnp
from jax import lax
from jax.experimental import pallas as pl
from jax.experimental.pallas import tpu as pltpu

BN_EPS = 1e-5
LEAKY_SLOPE = 0.1
_VMEM_LIMIT = 48 * 1024 * 1024  # safe scoped limit on v5e/v6e (128 MiB) and v7x (64 MiB)


def _round_up(a, m):
    return -(-a // m) * m


def _pick_tile(padded, candidates):
    for c in candidates:
        if padded % c == 0:
            return c
    return padded


# ---------------------------------------------------------------------------
# Pass 1: conv-as-matmul (bf16 MXU, f32 accumulate) + per-tile BN partial sums
# ---------------------------------------------------------------------------
def _conv_stats_kernel(p_ref, w_ref, y_ref, psum_ref, psumsq_ref, acc_ref):
    # p_ref:     (1, TM, TK) bf16 im2col patches tile (per sample)
    # w_ref:     (TK, TN)    bf16 weight tile
    # y_ref:     (1, TM, TN) bf16 conv output tile
    # psum_ref:  (1, 1, 1, TN) f32 per-tile channel sum
    # psumsq_ref:(1, 1, 1, TN) f32 per-tile channel sum of squares
    # acc_ref:   (TM, TN)    f32 VMEM accumulator scratch
    k = pl.program_id(3)

    @pl.when(k == 0)
    def _():
        acc_ref[...] = jnp.zeros_like(acc_ref)

    acc_ref[...] += jnp.dot(p_ref[0], w_ref[...],
                            preferred_element_type=jnp.float32)

    @pl.when(k == pl.num_programs(3) - 1)
    def _():
        acc = acc_ref[...]
        # Stats from the f32 accumulator (exact); intermediate stored as bf16.
        y_ref[0] = acc.astype(y_ref.dtype)
        psum_ref[...] = jnp.sum(acc, axis=0, keepdims=True)[None, None]
        psumsq_ref[...] = jnp.sum(acc * acc, axis=0, keepdims=True)[None, None]


# ---------------------------------------------------------------------------
# Pass 2: folded BN affine + LeakyReLU, fused per-tile transpose -> NCHW layout
# ---------------------------------------------------------------------------
def _bn_lrelu_nchw_kernel(y_ref, scale_ref, shift_ref, o_ref):
    # y_ref: (1, THW, TNo) bf16; scale/shift: (1, 1, TNo) f32; o_ref: (1, TNo, THW) f32
    z = y_ref[0].astype(jnp.float32) * scale_ref[0] + shift_ref[0]
    z = jnp.where(z >= 0, z, LEAKY_SLOPE * z)
    o_ref[0] = z.T  # XLU tile transpose; avoids a trailing XLA NHWC->NCHW transpose


def _im2col_nchw(x, kernel_size, stride, padding):
    """x: (N, C, H, W) -> patches (N, Ho*Wo, C*K*K), flattened (c, kh, kw)."""
    N, C, H, W = x.shape
    K, S, P = kernel_size, stride, padding
    Ho = (H + 2 * P - K) // S + 1
    Wo = (W + 2 * P - K) // S + 1
    xp = jnp.pad(x, ((0, 0), (0, 0), (P, P), (P, P)))
    cols = []
    for kh in range(K):
        for kw in range(K):
            cols.append(xp[:, :, kh:kh + S * Ho:S, kw:kw + S * Wo:S])  # (N,C,Ho,Wo)
    patches = jnp.stack(cols, axis=2).reshape(N, C * K * K, Ho * Wo)
    return patches.transpose(0, 2, 1), Ho, Wo  # (N, Ho*Wo, C*K*K)


@functools.partial(jax.jit, static_argnames=("kernel_size", "stride", "padding"))
def convolutional_forward(x, weight, gamma, beta, *, kernel_size, stride, padding):
    """Equivalent of Convolutional.forward for NCHW float32 input `x`.

    weight: (O, C, K, K) conv weight (bias=False); gamma, beta: (O,) BN affine.
    """
    N, C, H, W = x.shape
    O = weight.shape[0]
    K, S, P = kernel_size, stride, padding
    CKK = C * K * K

    # im2col in bf16 (precision tradeoff: bf16 MXU inputs, f32 accumulation).
    patches, Ho, Wo = _im2col_nchw(x.astype(jnp.bfloat16), K, S, P)  # (N, HW, CKK)
    HW = Ho * Wo
    w_mat = weight.reshape(O, CKK).T.astype(jnp.bfloat16)            # (CKK, O)

    HW_pad = _round_up(HW, 128)
    O_pad = _round_up(O, 128)
    K_pad = _round_up(CKK, 128)

    # --- pass-1 tiles: as large as the padded problem allows (all 128-mult);
    # worst-case working set (512,512,1024) with double buffering is ~10 MiB.
    TM = _pick_tile(HW_pad, (512, 256, 128))
    TN = _pick_tile(O_pad, (512, 256, 128))
    TK = _pick_tile(K_pad, (1024, 512, 256, 128))
    hw_tiles, o_tiles, k_tiles = HW_pad // TM, O_pad // TN, K_pad // TK

    # Zero padding: padded rows/channels contribute exactly 0 to the sums.
    patches_p = jnp.pad(patches, ((0, 0), (0, HW_pad - HW), (0, K_pad - CKK)))
    w_p = jnp.pad(w_mat, ((0, K_pad - CKK), (0, O_pad - O)))

    y, psum, psumsq = pl.pallas_call(
        _conv_stats_kernel,
        out_shape=(
            jax.ShapeDtypeStruct((N, HW_pad, O_pad), jnp.bfloat16),
            jax.ShapeDtypeStruct((N, hw_tiles, 1, O_pad), jnp.float32),
            jax.ShapeDtypeStruct((N, hw_tiles, 1, O_pad), jnp.float32),
        ),
        grid_spec=pltpu.PrefetchScalarGridSpec(
            num_scalar_prefetch=0,
            grid=(N, hw_tiles, o_tiles, k_tiles),
            in_specs=[
                pl.BlockSpec((1, TM, TK), lambda n, i, j, k: (n, i, k)),
                pl.BlockSpec((TK, TN), lambda n, i, j, k: (k, j)),
            ],
            out_specs=(
                pl.BlockSpec((1, TM, TN), lambda n, i, j, k: (n, i, j)),
                pl.BlockSpec((1, 1, 1, TN), lambda n, i, j, k: (n, i, 0, j)),
                pl.BlockSpec((1, 1, 1, TN), lambda n, i, j, k: (n, i, 0, j)),
            ),
            scratch_shapes=[pltpu.VMEM((TM, TN), jnp.float32)],
        ),
        compiler_params=pltpu.CompilerParams(
            dimension_semantics=("parallel", "parallel", "parallel", "arbitrary"),
            vmem_limit_bytes=_VMEM_LIMIT,
        ),
    )(patches_p, w_p)

    # Tiny cross-tile reduction + BN parameter folding (exact stats over N*HW).
    count = jnp.float32(N * HW)
    s_tot = jnp.sum(psum, axis=(0, 1, 2))        # (O_pad,)
    ss_tot = jnp.sum(psumsq, axis=(0, 1, 2))     # (O_pad,)
    mean = s_tot / count
    var = jnp.maximum(ss_tot / count - mean * mean, 0.0)  # biased variance
    gamma_p = jnp.pad(gamma.astype(jnp.float32), (0, O_pad - O))
    beta_p = jnp.pad(beta.astype(jnp.float32), (0, O_pad - O))
    scale = gamma_p * lax.rsqrt(var + BN_EPS)
    shift = beta_p - mean * scale

    # --- pass 2: HBM-bound epilogue; big lane-dense tiles, decoupled from pass 1.
    TNo2 = _pick_tile(O_pad, (256, 128))
    THW2 = _pick_tile(HW_pad, (2048, 1024, 512, 256, 128))

    out_pad = pl.pallas_call(
        _bn_lrelu_nchw_kernel,
        out_shape=jax.ShapeDtypeStruct((N, O_pad, HW_pad), jnp.float32),
        grid_spec=pltpu.PrefetchScalarGridSpec(
            num_scalar_prefetch=0,
            grid=(N, O_pad // TNo2, HW_pad // THW2),
            in_specs=[
                pl.BlockSpec((1, THW2, TNo2), lambda n, j, i: (n, i, j)),
                pl.BlockSpec((1, 1, TNo2), lambda n, j, i: (0, 0, j)),
                pl.BlockSpec((1, 1, TNo2), lambda n, j, i: (0, 0, j)),
            ],
            out_specs=pl.BlockSpec((1, TNo2, THW2), lambda n, j, i: (n, j, i)),
        ),
        compiler_params=pltpu.CompilerParams(
            dimension_semantics=("parallel", "parallel", "parallel"),
            vmem_limit_bytes=_VMEM_LIMIT,
        ),
    )(y, scale.reshape(1, 1, O_pad), shift.reshape(1, 1, O_pad))

    # Already NCHW-ordered: just slice off padding. No XLA transpose.
    return out_pad[:, :O, :HW].reshape(N, O, Ho, Wo)


def _reference(x, weight, gamma, beta, stride, padding, matmul_dtype=jnp.float32):
    """Plain-JAX reference matching PyTorch Conv2d + BN(train) + LeakyReLU."""
    y = lax.conv_general_dilated(
        x.astype(matmul_dtype), weight.astype(matmul_dtype),
        window_strides=(stride, stride),
        padding=((padding, padding), (padding, padding)),
        dimension_numbers=("NCHW", "OIHW", "NCHW"),
        preferred_element_type=jnp.float32)
    mean = jnp.mean(y, axis=(0, 2, 3), keepdims=True)
    var = jnp.mean((y - mean) ** 2, axis=(0, 2, 3), keepdims=True)
    y_hat = (y - mean) / jnp.sqrt(var + BN_EPS)
    z = y_hat * gamma.reshape(1, -1, 1, 1) + beta.reshape(1, -1, 1, 1)
    return jnp.where(z >= 0, z, LEAKY_SLOPE * z)


if __name__ == "__main__":
    in_channels, out_channels = 4, 8
    kernel_size, stride, padding = 3, 1, 1
    N, H, W = 2, 16, 16

    key = jax.random.PRNGKey(0)
    kx, kw, kg, kb = jax.random.split(key, 4)
    x = jax.random.normal(kx, (N, in_channels, H, W), dtype=jnp.float32)
    weight = jax.random.normal(
        kw, (out_channels, in_channels, kernel_size, kernel_size),
        dtype=jnp.float32) * 0.1
    gamma = 1.0 + 0.1 * jax.random.normal(kg, (out_channels,), dtype=jnp.float32)
    beta = 0.1 * jax.random.normal(kb, (out_channels,), dtype=jnp.float32)

    out = convolutional_forward(
        x, weight, gamma, beta,
        kernel_size=kernel_size, stride=stride, padding=padding)
    out = jax.block_until_ready(out)
    assert out.shape == (N, out_channels, H, W), out.shape

    # Check vs reference with bf16 conv operands (kernel uses bf16 MXU inputs
    # with f32 accumulation; intermediate stored in bf16).
    ref_bf16 = _reference(x, weight, gamma, beta, stride, padding,
                          matmul_dtype=jnp.bfloat16)
    assert jnp.allclose(out, ref_bf16, atol=2e-2, rtol=2e-2), \
        "mismatch vs bf16-matched reference"

    # Sanity check vs pure-f32 reference (gap is bf16 rounding of inputs / y).
    ref_f32 = _reference(x, weight, gamma, beta, stride, padding,
                         matmul_dtype=jnp.float32)
    assert float(jnp.max(jnp.abs(out - ref_f32))) < 0.1, \
        "mismatch vs f32 reference"

    print("KERNEL_OK")
</pallas_src>

<mosaic_0001>
module attributes {stable_mosaic.version = 11 : i64} {
  func.func @_conv_stats_kernel(%arg0: i32, %arg1: i32, %arg2: i32, %arg3: i32, %arg4: memref<1x256x128xbf16, #tpu.memory_space<vmem>>, %arg5: memref<128x128xbf16, #tpu.memory_space<vmem>>, %arg6: memref<1x256x128xbf16, #tpu.memory_space<vmem>>, %arg7: memref<1x1x1x128xf32, #tpu.memory_space<vmem>>, %arg8: memref<1x1x1x128xf32, #tpu.memory_space<vmem>>, %arg9: memref<256x128xf32, #tpu.memory_space<vmem>>) attributes {dimension_semantics = [#tpu.dimension_semantics<parallel>, #tpu.dimension_semantics<parallel>, #tpu.dimension_semantics<parallel>, #tpu.dimension_semantics<arbitrary>], iteration_bounds = array<i64: 2, 1, 1, 1>, scalar_prefetch = 0 : i64, scratch_operands = 1 : i64, tpu.core_type = #tpu.core_type<tc>, window_params = [{transform_indices = @transform_0, window_bounds = array<i64: 1, 256, 128>}, {transform_indices = @transform_1, window_bounds = array<i64: 128, 128>}, {transform_indices = @transform_2, window_bounds = array<i64: 1, 256, 128>}, {transform_indices = @transform_3, window_bounds = array<i64: 1, 1, 1, 128>}, {transform_indices = @transform_4, window_bounds = array<i64: 1, 1, 1, 128>}]} {
    %c0_i32 = arith.constant 0 : i32
    %0 = arith.cmpi eq, %arg3, %c0_i32 : i32
    %1 = arith.extui %0 : i1 to i32
    %c0_i32_0 = arith.constant 0 : i32
    %2 = arith.cmpi ne, %1, %c0_i32_0 : i32
    scf.if %2 {
      %cst_11 = arith.constant 0.000000e+00 : f32
      %13 = vector.broadcast %cst_11 : f32 to vector<256x128xf32>
      %c0_12 = arith.constant 0 : index
      %c0_13 = arith.constant 0 : index
      %14 = vector.load %arg9[%c0_12, %c0_13] : memref<256x128xf32, #tpu.memory_space<vmem>>, vector<256x128xf32>
      tpu.vector_store %arg9[%c0_12, %c0_13], %13 {strides = array<i32>} : memref<256x128xf32, #tpu.memory_space<vmem>>, vector<256x128xf32>,
    } else {
    }
    %c0 = arith.constant 0 : index
    %c0_1 = arith.constant 0 : index
    %3 = vector.load %arg9[%c0, %c0_1] : memref<256x128xf32, #tpu.memory_space<vmem>>, vector<256x128xf32>
    %c0_2 = arith.constant 0 : index
    %c0_3 = arith.constant 0 : index
    %c0_4 = arith.constant 0 : index
    %4 = vector.load %arg4[%c0_2, %c0_3, %c0_4] : memref<1x256x128xbf16, #tpu.memory_space<vmem>>, vector<1x256x128xbf16>
    %5 = vector.shape_cast %4 : vector<1x256x128xbf16> to vector<256x128xbf16>
    %c0_5 = arith.constant 0 : index
    %c0_6 = arith.constant 0 : index
    %6 = vector.load %arg5[%c0_5, %c0_6] : memref<128x128xbf16, #tpu.memory_space<vmem>>, vector<128x128xbf16>
    %cst = arith.constant dense<0.000000e+00> : vector<256x128xf32>
    %7 = tpu.matmul %5, %6, %cst {dimension_numbers = #tpu.dot_dimension_numbers<[1], [0], [0], [1], [0, 0, 1, 1], [], []>} : vector<256x128xbf16>, vector<128x128xbf16>, vector<256x128xf32> -> vector<256x128xf32>
    %8 = arith.addf %3, %7 : vector<256x128xf32>
    %c0_7 = arith.constant 0 : index
    %c0_8 = arith.constant 0 : index
    %9 = vector.load %arg9[%c0_7, %c0_8] : memref<256x128xf32, #tpu.memory_space<vmem>>, vector<256x128xf32>
    tpu.vector_store %arg9[%c0_7, %c0_8], %8 {strides = array<i32>} : memref<256x128xf32, #tpu.memory_space<vmem>>, vector<256x128xf32>,
    %c0_i32_9 = arith.constant 0 : i32
    %10 = arith.cmpi eq, %arg3, %c0_i32_9 : i32
    %11 = arith.extui %10 : i1 to i32
    %c0_i32_10 = arith.constant 0 : i32
    %12 = arith.cmpi ne, %11, %c0_i32_10 : i32
    scf.if %12 {
      %c0_11 = arith.constant 0 : index
      %c0_12 = arith.constant 0 : index
      %13 = vector.load %arg9[%c0_11, %c0_12] : memref<256x128xf32, #tpu.memory_space<vmem>>, vector<256x128xf32>
      %14 = arith.truncf %13 : vector<256x128xf32> to vector<256x128xbf16>
      %c0_13 = arith.constant 0 : index
      %c0_14 = arith.constant 0 : index
      %c0_15 = arith.constant 0 : index
      %15 = vector.load %arg6[%c0_13, %c0_14, %c0_15] : memref<1x256x128xbf16, #tpu.memory_space<vmem>>, vector<1x256x128xbf16>
      %16 = vector.shape_cast %15 : vector<1x256x128xbf16> to vector<256x128xbf16>
      %17 = vector.shape_cast %14 : vector<256x128xbf16> to vector<1x256x128xbf16>
      tpu.vector_store %arg6[%c0_13, %c0_14, %c0_15], %17 {strides = array<i32>} : memref<1x256x128xbf16, #tpu.memory_space<vmem>>, vector<1x256x128xbf16>,
      %cst_16 = arith.constant dense<0.000000e+00> : vector<128xf32>
      %18 = vector.multi_reduction <add>, %13, %cst_16 [0] : vector<256x128xf32> to vector<128xf32>
      %19 = vector.shape_cast %18 : vector<128xf32> to vector<1x128xf32>
      %20 = vector.shape_cast %19 : vector<1x128xf32> to vector<1x1x1x128xf32>
      %c0_17 = arith.constant 0 : index
      %c0_18 = arith.constant 0 : index
      %c0_19 = arith.constant 0 : index
      %c0_20 = arith.constant 0 : index
      %21 = vector.load %arg7[%c0_17, %c0_18, %c0_19, %c0_20] : memref<1x1x1x128xf32, #tpu.memory_space<vmem>>, vector<1x1x1x128xf32>
      tpu.vector_store %arg7[%c0_17, %c0_18, %c0_19, %c0_20], %20 {strides = array<i32>} : memref<1x1x1x128xf32, #tpu.memory_space<vmem>>, vector<1x1x1x128xf32>,
      %22 = arith.mulf %13, %13 : vector<256x128xf32>
      %cst_21 = arith.constant dense<0.000000e+00> : vector<128xf32>
      %23 = vector.multi_reduction <add>, %22, %cst_21 [0] : vector<256x128xf32> to vector<128xf32>
      %24 = vector.shape_cast %23 : vector<128xf32> to vector<1x128xf32>
      %25 = vector.shape_cast %24 : vector<1x128xf32> to vector<1x1x1x128xf32>
      %c0_22 = arith.constant 0 : index
      %c0_23 = arith.constant 0 : index
      %c0_24 = arith.constant 0 : index
      %c0_25 = arith.constant 0 : index
      %26 = vector.load %arg8[%c0_22, %c0_23, %c0_24, %c0_25] : memref<1x1x1x128xf32, #tpu.memory_space<vmem>>, vector<1x1x1x128xf32>
      tpu.vector_store %arg8[%c0_22, %c0_23, %c0_24, %c0_25], %25 {strides = array<i32>} : memref<1x1x1x128xf32, #tpu.memory_space<vmem>>, vector<1x1x1x128xf32>,
    } else {
    }
    return
  }
  func.func @transform_0(%arg0: i32, %arg1: i32, %arg2: i32, %arg3: i32) -> (i32, i32, i32) {
    %c0_i32 = arith.constant 0 : i32
    return %arg0, %arg1, %arg3 : i32, i32, i32
  }
  func.func @transform_1(%arg0: i32, %arg1: i32, %arg2: i32, %arg3: i32) -> (i32, i32) {
    %c0_i32 = arith.constant 0 : i32
    return %arg3, %arg2 : i32, i32
  }
  func.func @transform_2(%arg0: i32, %arg1: i32, %arg2: i32, %arg3: i32) -> (i32, i32, i32) {
    %c0_i32 = arith.constant 0 : i32
    return %arg0, %arg1, %arg2 : i32, i32, i32
  }
  func.func @transform_3(%arg0: i32, %arg1: i32, %arg2: i32, %arg3: i32) -> (i32, i32, i32, i32) {
    %c0_i32 = arith.constant 0 : i32
    %c0_i32_0 = arith.constant 0 : i32
    return %arg0, %arg1, %c0_i32, %arg2 : i32, i32, i32, i32
  }
  func.func @transform_4(%arg0: i32, %arg1: i32, %arg2: i32, %arg3: i32) -> (i32, i32, i32, i32) {
    %c0_i32 = arith.constant 0 : i32
    %c0_i32_0 = arith.constant 0 : i32
    return %arg0, %arg1, %c0_i32, %arg2 : i32, i32, i32, i32
  }
}

module attributes {stable_mosaic.version = 11 : i64} {
  func.func @_bn_lrelu_nchw_kernel(%arg0: i32, %arg1: i32, %arg2: i32, %arg3: memref<1x256x128xbf16, #tpu.memory_space<vmem>>, %arg4: memref<1x1x128xf32, #tpu.memory_space<vmem>>, %arg5: memref<1x1x128xf32, #tpu.memory_space<vmem>>, %arg6: memref<1x128x256xf32, #tpu.memory_space<vmem>>) attributes {dimension_semantics = [#tpu.dimension_semantics<parallel>, #tpu.dimension_semantics<parallel>, #tpu.dimension_semantics<parallel>], iteration_bounds = array<i64: 2, 1, 1>, scalar_prefetch = 0 : i64, scratch_operands = 0 : i64, tpu.core_type = #tpu.core_type<tc>, window_params = [{transform_indices = @transform_0, window_bounds = array<i64: 1, 256, 128>}, {transform_indices = @transform_1, window_bounds = array<i64: 1, 1, 128>}, {transform_indices = @transform_2, window_bounds = array<i64: 1, 1, 128>}, {transform_indices = @transform_3, window_bounds = array<i64: 1, 128, 256>}]} {
    %c0 = arith.constant 0 : index
    %c0_0 = arith.constant 0 : index
    %c0_1 = arith.constant 0 : index
    %0 = vector.load %arg3[%c0, %c0_0, %c0_1] : memref<1x256x128xbf16, #tpu.memory_space<vmem>>, vector<1x256x128xbf16>
    %1 = vector.shape_cast %0 : vector<1x256x128xbf16> to vector<256x128xbf16>
    %2 = arith.extf %1 : vector<256x128xbf16> to vector<256x128xf32>
    %c0_2 = arith.constant 0 : index
    %c0_3 = arith.constant 0 : index
    %c0_4 = arith.constant 0 : index
    %3 = vector.load %arg4[%c0_2, %c0_3, %c0_4] : memref<1x1x128xf32, #tpu.memory_space<vmem>>, vector<1x1x128xf32>
    %4 = vector.shape_cast %3 : vector<1x1x128xf32> to vector<1x128xf32>
    %5 = vector.broadcast %4 : vector<1x128xf32> to vector<256x128xf32>
    %6 = arith.mulf %2, %5 : vector<256x128xf32>
    %c0_5 = arith.constant 0 : index
    %c0_6 = arith.constant 0 : index
    %c0_7 = arith.constant 0 : index
    %7 = vector.load %arg5[%c0_5, %c0_6, %c0_7] : memref<1x1x128xf32, #tpu.memory_space<vmem>>, vector<1x1x128xf32>
    %8 = vector.shape_cast %7 : vector<1x1x128xf32> to vector<1x128xf32>
    %9 = vector.broadcast %8 : vector<1x128xf32> to vector<256x128xf32>
    %10 = arith.addf %6, %9 : vector<256x128xf32>
    %cst = arith.constant 0.000000e+00 : f32
    %11 = vector.broadcast %cst : f32 to vector<256x128xf32>
    %12 = arith.cmpf oge, %10, %11 : vector<256x128xf32>
    %cst_8 = arith.constant 1.000000e-01 : f32
    %13 = vector.broadcast %cst_8 : f32 to vector<256x128xf32>
    %14 = arith.mulf %13, %10 : vector<256x128xf32>
    %15 = arith.select %12, %10, %14 : vector<256x128xi1>, vector<256x128xf32>
    %16 = tpu.transpose %15, [1, 0] : vector<256x128xf32> -> vector<128x256xf32>
    %c0_9 = arith.constant 0 : index
    %c0_10 = arith.constant 0 : index
    %c0_11 = arith.constant 0 : index
    %17 = vector.load %arg6[%c0_9, %c0_10, %c0_11] : memref<1x128x256xf32, #tpu.memory_space<vmem>>, vector<1x128x256xf32>
    %18 = vector.shape_cast %17 : vector<1x128x256xf32> to vector<128x256xf32>
    %19 = vector.shape_cast %16 : vector<128x256xf32> to vector<1x128x256xf32>
    tpu.vector_store %arg6[%c0_9, %c0_10, %c0_11], %19 {strides = array<i32>} : memref<1x128x256xf32, #tpu.memory_space<vmem>>, vector<1x128x256xf32>,
    return
  }
  func.func @transform_0(%arg0: i32, %arg1: i32, %arg2: i32) -> (i32, i32, i32) {
    %c0_i32 = arith.constant 0 : i32
    return %arg0, %arg2, %arg1 : i32, i32, i32
  }
  func.func @transform_1(%arg0: i32, %arg1: i32, %arg2: i32) -> (i32, i32, i32) {
    %c0_i32 = arith.constant 0 : i32
    %c0_i32_0 = arith.constant 0 : i32
    %c0_i32_1 = arith.constant 0 : i32
    return %c0_i32, %c0_i32_0, %arg1 : i32, i32, i32
  }
  func.func @transform_2(%arg0: i32, %arg1: i32, %arg2: i32) -> (i32, i32, i32) {
    %c0_i32 = arith.constant 0 : i32
    %c0_i32_0 = arith.constant 0 : i32
    %c0_i32_1 = arith.constant 0 : i32
    return %c0_i32, %c0_i32_0, %arg1 : i32, i32, i32
  }
  func.func @transform_3(%arg0: i32, %arg1: i32, %arg2: i32) -> (i32, i32, i32) {
    %c0_i32 = arith.constant 0 : i32
    return %arg0, %arg1, %arg2 : i32, i32, i32
  }
}

</mosaic_0001>

<bundles_post_ra>
// kernel: convolutional_forward.3
= control target key start
LH: loop header
LB: loop body
LE: loop exit
PB: predicated region body
PF: predicated region fallthrough
CT: control target
= control target key end

     0   :  { %s903_s12 = smov 0   ;;  %s905_s13 = smov 0   ;;  %s1067_s0 = inlined_call_operand.vmem [shape: bf16[2,256,128], index: 0, kind: input, shape index: {}]   ;;  %s1068_s1 = inlined_call_operand.vmem [shape: f32[1,1,128], index: 1, kind: input, shape index: {}]   ;;  %s1069_s2 = inlined_call_operand.vmem [shape: f32[1,1,128], index: 2, kind: input, shape index: {}]   ;;  %s1070_s3 = inlined_call_operand.vmem [shape: f32[2,128,256], index: 3, kind: output, shape index: {}]  }
   0x1   :  { %s907_s14 = smov 0  }
   0x2 LB: > { %s32_s15 = sadd.s32 1, %s877_s13  ;;  %p745_p0 = scmp.ge.s32.totalorder %s881_s14, 1  ;;  %s881_s14 = sphi %s907_s14, %s13_s14   ;;  %s877_s13 = sphi %s905_s13, %s1072_s13   ;;  %s873_s12 = sphi %s903_s12, %s1071_s12  }
   0x3   : > { %p34_p1 = scmp.ge.s32.totalorder %s32_s15, 2  ;;  %p188_p2 = scmp.lt.s32.totalorder %s881_s14, 3 }
   0x5   : > { %s1074_s15 = smov (%p34_p1, %s32_s15), 0  ;;  %p189_p3 = pnand %p745_p0, %p188_p2 }
   0x6   : > { %p235_p4 = scmp.lt.s32.totalorder (!%p189_p3), %s873_s12, 1  ;;  %v932_v0 = vld [vmem:[%s1068_s1] ss:$0 sm:$0xff] (!%p189_p3) }
   0x7   : > { %192 = sbr.rel (%p189_p3) target bundleno = 218 (0xda), region = 32  ;;  %v941_v9 = vld [vmem:[%s1069_s2] ss:$0 sm:$0xff] (!%p189_p3) }
   0xe   : > { %s1076_s12 = smov (!%p235_p4, %s873_s12), 1 }
   0xf   : > { %s754_s16 = sshll.u32 %s1076_s12, 7  ;;  %s755_s24 = sshll.u32 %s1076_s12, 8 }
  0x10   : > { %s927_s19 = scalar_lea.vmem %s1067_s0, %s754_s16  ;;  %s1024_s27 = scalar_lea.vmem %s1070_s3, %s755_s24 }
  0x11   : > { %v827_v1 = vld [vmem:[%s927_s19 + $0x40] sm:$0xff]   ;;  %v828_v3 = vld [vmem:[%s927_s19 + $0x48] sm:$0xff]   ;;  %v829_v36 = vld [vmem:[%s927_s19 + $0x50] sm:$0xff]  }
  0x12   : > { %v757_v2 = vld [vmem:[%s927_s19] sm:$0xff]   ;;  %v790_v4 = vunpack.c.l.bf16 %v827_v1  ;;  %v791_v6 = vunpack.c.h.bf16 %v827_v1  ;;  %v820_v8 = vld [vmem:[%s927_s19 + $0x8] sm:$0xff]   ;;  %v794_v10 = vunpack.c.l.bf16 %v828_v3  ;;  %v795_v12 = vunpack.c.h.bf16 %v828_v3  ;;  %v821_v37 = vld [vmem:[%s927_s19 + $0x10] sm:$0xff]  }
  0x13   : > { %v758_v5 = vunpack.c.l.bf16 %v757_v2  ;;  %v759_v7 = vunpack.c.h.bf16 %v757_v2  ;;  %v762_v11 = vunpack.c.l.bf16 %v820_v8  ;;  %v763_v13 = vunpack.c.h.bf16 %v820_v8  ;;  %v830_v38 = vld [vmem:[%s927_s19 + $0x58] sm:$0xff]   ;;  %v823_v8 = vld [vmem:[%s927_s19 + $0x20] sm:$0xff]  }
  0x14   : > { %v356_v14 = vmul.f32 %v790_v4, %v932_v0  ;;  %v357_v16 = vmul.f32 %v791_v6, %v932_v0  ;;  %v358_v18 = vmul.f32 %v794_v10, %v932_v0  ;;  %v359_v20 = vmul.f32 %v795_v12, %v932_v0  ;;  %v822_v43 = vld [vmem:[%s927_s19 + $0x18] sm:$0xff]  }
  0x15   : > { %v340_v15 = vmul.f32 %v758_v5, %v932_v0  ;;  %v341_v17 = vmul.f32 %v759_v7, %v932_v0  ;;  %v342_v19 = vmul.f32 %v762_v11, %v932_v0  ;;  %v343_v28 = vmul.f32 %v763_v13, %v932_v0  ;;  %v831_v7 = vld [vmem:[%s927_s19 + $0x60] sm:$0xff]  }
  0x16   : > { %v395_v21 = vadd.f32 %v941_v9, %v356_v14  ;;  %v396_v23 = vadd.f32 %v941_v9, %v357_v16  ;;  %v397_v25 = vadd.f32 %v941_v9, %v358_v18  ;;  %v398_v27 = vadd.f32 %v941_v9, %v359_v20 }
  0x17   : > { %v379_v22 = vadd.f32 %v941_v9, %v340_v15  ;;  %v380_v24 = vadd.f32 %v941_v9, %v341_v17  ;;  %v381_v26 = vadd.f32 %v941_v9, %v342_v19  ;;  %v382_v42 = vadd.f32 %v941_v9, %v343_v28 }
  0x18   : > { %vm427_vm0 = vcmp.ge.f32.partialorder %v395_v21, 0.0  ;;  %v459_v29 = vmul.f32 0.1, %v395_v21  ;;  %vm428_vm2 = vcmp.ge.f32.partialorder %v396_v23, 0.0  ;;  %v460_v31 = vmul.f32 0.1, %v396_v23 }
  0x19   : > { %vm411_vm1 = vcmp.ge.f32.partialorder %v379_v22, 0.0  ;;  %v443_v30 = vmul.f32 0.1, %v379_v22  ;;  %vm412_vm3 = vcmp.ge.f32.partialorder %v380_v24, 0.0  ;;  %v444_v32 = vmul.f32 0.1, %v380_v24 }
  0x1a   : > { %v491_v33 = vsel %vm427_vm0, %v395_v21, %v459_v29  ;;  %vm429_vm4 = vcmp.ge.f32.partialorder %v397_v25, 0.0  ;;  %v461_v35 = vmul.f32 0.1, %v397_v25  ;;  %v492_v39 = vsel %vm428_vm2, %v396_v23, %v460_v31  ;;  %v824_v31 = vld [vmem:[%s927_s19 + $0x28] sm:$0xff]  }
  0x1b   : > { %v475_v34 = vsel %vm411_vm1, %v379_v22, %v443_v30  ;;  %539 = vxpose.xlu1.b32.start [1/16] %v491_v33, 128  ;;  %v476_v40 = vsel %vm412_vm3, %v380_v24, %v444_v32  ;;  %v445_v41 = vmul.f32 0.1, %v381_v26  ;;  %vm413_vm5 = vcmp.ge.f32.partialorder %v381_v26, 0.0 }
  0x1c   : > { %507 = vxpose.xlu0.b32.start [1/16] %v475_v34, 128  ;;  %v493_v44 = vsel %vm429_vm4, %v397_v25, %v461_v35  ;;  %v798_v45 = vunpack.c.l.bf16 %v829_v36  ;;  %v766_v46 = vunpack.c.l.bf16 %v821_v37  ;;  %vm430_vm6 = vcmp.ge.f32.partialorder %v398_v27, 0.0 }
  0x1d   : > { %v799_v47 = vunpack.c.h.bf16 %v829_v36  ;;  %v767_v48 = vunpack.c.h.bf16 %v821_v37  ;;  %v802_v49 = vunpack.c.l.bf16 %v830_v38  ;;  %v462_v50 = vmul.f32 0.1, %v398_v27 }
  0x1e   : > { %v360_v51 = vmul.f32 %v798_v45, %v932_v0  ;;  %v344_v52 = vmul.f32 %v766_v46, %v932_v0  ;;  %v770_v53 = vunpack.c.l.bf16 %v822_v43  ;;  %v477_v54 = vsel %vm413_vm5, %v381_v26, %v445_v41 }
  0x1f   : > { %540 = vxpose.xlu1.b32.cont [2/16] %v492_v39, 128  ;;  %v446_v55 = vmul.f32 0.1, %v382_v42  ;;  %v361_v56 = vmul.f32 %v799_v47, %v932_v0  ;;  %v345_v57 = vmul.f32 %v767_v48, %v932_v0  ;;  %vm414_vm7 = vcmp.ge.f32.partialorder %v382_v42, 0.0 }
  0x20   : > { %508 = vxpose.xlu0.b32.cont [2/16] %v476_v40, 128  ;;  %v399_v58 = vadd.f32 %v941_v9, %v360_v51  ;;  %v383_v59 = vadd.f32 %v941_v9, %v344_v52  ;;  %v362_v61 = vmul.f32 %v802_v49, %v932_v0  ;;  %v803_v62 = vunpack.c.h.bf16 %v830_v38  ;;  %v833_v52 = vld [vmem:[%s927_s19 + $0x70] sm:$0xff]  }
  0x21   : > { %v400_v60 = vadd.f32 %v941_v9, %v361_v56  ;;  %v494_v63 = vsel %vm430_vm6, %v398_v27, %v462_v50  ;;  %v346_v1 = vmul.f32 %v770_v53, %v932_v0  ;;  %v771_v2 = vunpack.c.h.bf16 %v822_v43  ;;  %v832_v27 = vld [vmem:[%s927_s19 + $0x68] sm:$0xff]   ;;  %v825_v53 = vld [vmem:[%s927_s19 + $0x30] sm:$0xff]  }
  0x22   : > { %v478_v3 = vsel %vm414_vm7, %v382_v42, %v446_v55  ;;  %v463_v4 = vmul.f32 0.1, %v399_v58  ;;  %v447_v5 = vmul.f32 0.1, %v383_v59  ;;  %v384_v6 = vadd.f32 %v941_v9, %v345_v57 }
  0x23   : > { %541 = vxpose.xlu1.b32.cont [3/16] %v493_v44, 128  ;;  %vm431_vm8 = vcmp.ge.f32.partialorder %v399_v58, 0.0  ;;  %vm415_vm9 = vcmp.ge.f32.partialorder %v383_v59, 0.0  ;;  %vm432_vm10 = vcmp.ge.f32.partialorder %v400_v60, 0.0  ;;  %v464_v10 = vmul.f32 0.1, %v400_v60 }
  0x24   : > { %509 = vxpose.xlu0.b32.cont [3/16] %v477_v54, 128  ;;  %v401_v11 = vadd.f32 %v941_v9, %v362_v61  ;;  %v363_v12 = vmul.f32 %v803_v62, %v932_v0  ;;  %v385_v13 = vadd.f32 %v941_v9, %v346_v1  ;;  %v347_v14 = vmul.f32 %v771_v2, %v932_v0 }
  0x25   : > { %v806_v15 = vunpack.c.l.bf16 %v831_v7  ;;  %v774_v16 = vunpack.c.l.bf16 %v823_v8  ;;  %v495_v17 = vsel %vm431_vm8, %v399_v58, %v463_v4  ;;  %v479_v18 = vsel %vm415_vm9, %v383_v59, %v447_v5 }
  0x26   : > { %v448_v19 = vmul.f32 0.1, %v384_v6  ;;  %vm416_vm11 = vcmp.ge.f32.partialorder %v384_v6, 0.0  ;;  %v496_v20 = vsel %vm432_vm10, %v400_v60, %v464_v10  ;;  %vm433_vm12 = vcmp.ge.f32.partialorder %v401_v11, 0.0 }
  0x27   : > { %542 = vxpose.xlu1.b32.cont [4/16] %v494_v63, 128  ;;  %v465_v21 = vmul.f32 0.1, %v401_v11  ;;  %v402_v22 = vadd.f32 %v941_v9, %v363_v12  ;;  %v449_v23 = vmul.f32 0.1, %v385_v13  ;;  %v386_v24 = vadd.f32 %v941_v9, %v347_v14 }
  0x28   : > { %510 = vxpose.xlu0.b32.cont [4/16] %v478_v3, 128  ;;  %v364_v25 = vmul.f32 %v806_v15, %v932_v0  ;;  %v348_v26 = vmul.f32 %v774_v16, %v932_v0  ;;  %v480_v28 = vsel %vm416_vm11, %v384_v6, %v448_v19  ;;  %vm417_vm13 = vcmp.ge.f32.partialorder %v385_v13, 0.0 }
  0x29   : > { %v807_v29 = vunpack.c.h.bf16 %v831_v7  ;;  %v775_v30 = vunpack.c.h.bf16 %v823_v8  ;;  %v497_v32 = vsel %vm433_vm12, %v401_v11, %v465_v21  ;;  %vm434_vm14 = vcmp.ge.f32.partialorder %v402_v22, 0.0  ;;  %v834_v7 = vld [vmem:[%s927_s19 + $0x78] sm:$0xff]  }
  0x2a   : > { %v466_v33 = vmul.f32 0.1, %v402_v22  ;;  %v810_v34 = vunpack.c.l.bf16 %v832_v27  ;;  %v481_v35 = vsel %vm417_vm13, %v385_v13, %v449_v23  ;;  %v450_v36 = vmul.f32 0.1, %v386_v24  ;;  %v826_v13 = vld [vmem:[%s927_s19 + $0x38] sm:$0xff]  }
  0x2b   : > { %543 = vxpose.xlu1.b32.cont [5/16] %v495_v17, 128  ;;  %v403_v37 = vadd.f32 %v941_v9, %v364_v25  ;;  %v387_v38 = vadd.f32 %v941_v9, %v348_v26  ;;  %vm418_vm15 = vcmp.ge.f32.partialorder %v386_v24, 0.0  ;;  %v365_v39 = vmul.f32 %v807_v29, %v932_v0 }
  0x2c   : > { %511 = vxpose.xlu0.b32.cont [5/16] %v479_v18, 128  ;;  %v349_v40 = vmul.f32 %v775_v30, %v932_v0  ;;  %v778_v41 = vunpack.c.l.bf16 %v824_v31  ;;  %v498_v42 = vsel %vm434_vm14, %v402_v22, %v466_v33  ;;  %v366_v43 = vmul.f32 %v810_v34, %v932_v0 }
  0x2d   : > { %v811_v44 = vunpack.c.h.bf16 %v832_v27  ;;  %v779_v45 = vunpack.c.h.bf16 %v824_v31  ;;  %v482_v46 = vsel %vm418_vm15, %v386_v24, %v450_v36  ;;  %vm435_vm0 = vcmp.ge.f32.partialorder %v403_v37, 0.0 }
  0x2e   : > { %v467_v47 = vmul.f32 0.1, %v403_v37  ;;  %v451_v48 = vmul.f32 0.1, %v387_v38  ;;  %vm419_vm1 = vcmp.ge.f32.partialorder %v387_v38, 0.0  ;;  %v404_v49 = vadd.f32 %v941_v9, %v365_v39 }
  0x2f   : > { %544 = vxpose.xlu1.b32.cont [6/16] %v496_v20, 128  ;;  %v388_v50 = vadd.f32 %v941_v9, %v349_v40  ;;  %v350_v51 = vmul.f32 %v778_v41, %v932_v0  ;;  %v367_v54 = vmul.f32 %v811_v44, %v932_v0  ;;  %v351_v55 = vmul.f32 %v779_v45, %v932_v0 }
  0x30   : > { %512 = vxpose.xlu0.b32.cont [6/16] %v480_v28, 128  ;;  %v499_v56 = vsel %vm435_vm0, %v403_v37, %v467_v47  ;;  %v483_v57 = vsel %vm419_vm1, %v387_v38, %v451_v48  ;;  %v405_v58 = vadd.f32 %v941_v9, %v366_v43  ;;  %v814_v59 = vunpack.c.l.bf16 %v833_v52 }
  0x31   : > { %v468_v60 = vmul.f32 0.1, %v404_v49  ;;  %v452_v61 = vmul.f32 0.1, %v388_v50  ;;  %v389_v62 = vadd.f32 %v941_v9, %v350_v51  ;;  %v782_v63 = vunpack.c.l.bf16 %v825_v53 }
  0x32   : > { %vm436_vm2 = vcmp.ge.f32.partialorder %v404_v49, 0.0  ;;  %vm420_vm3 = vcmp.ge.f32.partialorder %v388_v50, 0.0  ;;  %v406_v1 = vadd.f32 %v941_v9, %v367_v54  ;;  %v390_v2 = vadd.f32 %v941_v9, %v351_v55 }
  0x33   : > { %545 = vxpose.xlu1.b32.cont [7/16] %v497_v32, 128  ;;  %v469_v3 = vmul.f32 0.1, %v405_v58  ;;  %v368_v4 = vmul.f32 %v814_v59, %v932_v0  ;;  %v815_v5 = vunpack.c.h.bf16 %v833_v52  ;;  %v783_v6 = vunpack.c.h.bf16 %v825_v53 }
  0x34   : > { %513 = vxpose.xlu0.b32.cont [7/16] %v481_v35, 128  ;;  %v500_v8 = vsel %vm436_vm2, %v404_v49, %v468_v60  ;;  %v484_v10 = vsel %vm420_vm3, %v388_v50, %v452_v61  ;;  %v453_v11 = vmul.f32 0.1, %v389_v62  ;;  %v352_v12 = vmul.f32 %v782_v63, %v932_v0 }
  0x35   : > { %vm437_vm4 = vcmp.ge.f32.partialorder %v405_v58, 0.0  ;;  %vm421_vm5 = vcmp.ge.f32.partialorder %v389_v62, 0.0  ;;  %vm438_vm6 = vcmp.ge.f32.partialorder %v406_v1, 0.0  ;;  %v470_v14 = vmul.f32 0.1, %v406_v1 }
  0x36   : > { %v454_v15 = vmul.f32 0.1, %v390_v2  ;;  %v818_v16 = vunpack.c.l.bf16 %v834_v7  ;;  %vm422_vm7 = vcmp.ge.f32.partialorder %v390_v2, 0.0  ;;  %v407_v17 = vadd.f32 %v941_v9, %v368_v4 }
  0x37   : > { %546 = vxpose.xlu1.b32.cont [8/16] %v498_v42, 128  ;;  %v369_v18 = vmul.f32 %v815_v5, %v932_v0  ;;  %v353_v19 = vmul.f32 %v783_v6, %v932_v0  ;;  %v501_v20 = vsel %vm437_vm4, %v405_v58, %v469_v3  ;;  %v485_v21 = vsel %vm421_vm5, %v389_v62, %v453_v11 }
  0x38   : > { %514 = vxpose.xlu0.b32.cont [8/16] %v482_v46, 128  ;;  %v391_v22 = vadd.f32 %v941_v9, %v352_v12  ;;  %v786_v23 = vunpack.c.l.bf16 %v826_v13  ;;  %v502_v24 = vsel %vm438_vm6, %v406_v1, %v470_v14  ;;  %v486_v25 = vsel %vm422_vm7, %v390_v2, %v454_v15 }
  0x39   : > { %v370_v26 = vmul.f32 %v818_v16, %v932_v0  ;;  %vm439_vm8 = vcmp.ge.f32.partialorder %v407_v17, 0.0  ;;  %v471_v27 = vmul.f32 0.1, %v407_v17  ;;  %v408_v28 = vadd.f32 %v941_v9, %v369_v18 }
  0x3a   : > { %v392_v29 = vadd.f32 %v941_v9, %v353_v19  ;;  %v455_v30 = vmul.f32 0.1, %v391_v22  ;;  %v354_v31 = vmul.f32 %v786_v23, %v932_v0  ;;  %v819_v32 = vunpack.c.h.bf16 %v834_v7 }
  0x3b   : > { %547 = vxpose.xlu1.b32.cont [9/16] %v499_v56, 128  ;;  %v787_v33 = vunpack.c.h.bf16 %v826_v13  ;;  %vm423_vm9 = vcmp.ge.f32.partialorder %v391_v22, 0.0  ;;  %v409_v34 = vadd.f32 %v941_v9, %v370_v26  ;;  %v503_v35 = vsel %vm439_vm8, %v407_v17, %v471_v27 }
  0x3c   : > { %515 = vxpose.xlu0.b32.cont [9/16] %v483_v57, 128  ;;  %vm440_vm10 = vcmp.ge.f32.partialorder %v408_v28, 0.0  ;;  %v472_v36 = vmul.f32 0.1, %v408_v28  ;;  %v456_v37 = vmul.f32 0.1, %v392_v29  ;;  %v487_v38 = vsel %vm423_vm9, %v391_v22, %v455_v30 }
  0x3d   : > { %v393_v39 = vadd.f32 %v941_v9, %v354_v31  ;;  %v371_v40 = vmul.f32 %v819_v32, %v932_v0  ;;  %v355_v41 = vmul.f32 %v787_v33, %v932_v0  ;;  %vm424_vm11 = vcmp.ge.f32.partialorder %v392_v29, 0.0 }
  0x3e   : > { %v504_v42 = vsel %vm440_vm10, %v408_v28, %v472_v36  ;;  %v473_v43 = vmul.f32 0.1, %v409_v34  ;;  %v488_v44 = vsel %vm424_vm11, %v392_v29, %v456_v37  ;;  %vm441_vm12 = vcmp.ge.f32.partialorder %v409_v34, 0.0 }
  0x3f   : > { %548 = vxpose.xlu1.b32.cont [10/16] %v500_v8, 128  ;;  %v457_v45 = vmul.f32 0.1, %v393_v39  ;;  %v410_v46 = vadd.f32 %v941_v9, %v371_v40  ;;  %v394_v47 = vadd.f32 %v941_v9, %v355_v41  ;;  %vm425_vm13 = vcmp.ge.f32.partialorder %v393_v39, 0.0 }
  0x40   : > { %516 = vxpose.xlu0.b32.cont [10/16] %v484_v10, 128  ;;  %v505_v48 = vsel %vm441_vm12, %v409_v34, %v473_v43 }
  0x41   : > { %v489_v49 = vsel %vm425_vm13, %v393_v39, %v457_v45  ;;  %v474_v50 = vmul.f32 0.1, %v410_v46  ;;  %v458_v0 = vmul.f32 0.1, %v394_v47  ;;  %vm442_vm14 = vcmp.ge.f32.partialorder %v410_v46, 0.0 }
  0x42   : > { %vm426_vm15 = vcmp.ge.f32.partialorder %v394_v47, 0.0 }
  0x43   : > { %549 = vxpose.xlu1.b32.cont [11/16] %v501_v20, 128  ;;  %v506_v51 = vsel %vm442_vm14, %v410_v46, %v474_v50  ;;  %v490_v52 = vsel %vm426_vm15, %v394_v47, %v458_v0 }
  0x44   : > { %517 = vxpose.xlu0.b32.cont [11/16] %v485_v21, 128 }
  0x47   : > { %550 = vxpose.xlu1.b32.cont [12/16] %v502_v24, 128 }
  0x48   : > { %518 = vxpose.xlu0.b32.cont [12/16] %v486_v25, 128 }
  0x4b   : > { %551 = vxpose.xlu1.b32.cont [13/16] %v503_v35, 128 }
  0x4c   : > { %519 = vxpose.xlu0.b32.cont [13/16] %v487_v38, 128 }
  0x4f   : > { %552 = vxpose.xlu1.b32.cont [14/16] %v504_v42, 128 }
  0x50   : > { %520 = vxpose.xlu0.b32.cont [14/16] %v488_v44, 128 }
  0x53   : > { %553 = vxpose.xlu1.b32.cont [15/16] %v505_v48, 128 }
  0x54   : > { %521 = vxpose.xlu0.b32.cont [15/16] %v489_v49, 128 }
  0x57   : > { %554 = vxpose.xlu1.b32.end [16/16] %v506_v51, 128 }
  0x58   : > { %522 = vxpose.xlu0.b32.end [16/16] %v490_v52, 128 }
  0x9b   : > { %v555_v9 = vpop.trf.xlu1 }
  0x9c   : > { %v523_v53 = vpop.trf.xlu0  ;;  %572 = vst [vmem:[%s1024_s27 + $0x8] sm:$0xff] %v555_v9 }
  0x9d   : > { %571 = vst [vmem:[%s1024_s27] sm:$0xff] %v523_v53 }
  0x9f   : > { %v556_v54 = vpop.trf.xlu1 }
  0xa0   : > { %v524_v55 = vpop.trf.xlu0  ;;  %574 = vst [vmem:[%s1024_s27 + $0x18] sm:$0xff] %v556_v54 }
  0xa1   : > { %573 = vst [vmem:[%s1024_s27 + $0x10] sm:$0xff] %v524_v55 }
  0xa3   : > { %v557_v56 = vpop.trf.xlu1 }
  0xa4   : > { %v525_v57 = vpop.trf.xlu0  ;;  %576 = vst [vmem:[%s1024_s27 + $0x28] sm:$0xff] %v557_v56 }
  0xa5   : > { %575 = vst [vmem:[%s1024_s27 + $0x20] sm:$0xff] %v525_v57 }
  0xa7   : > { %v558_v58 = vpop.trf.xlu1 }
  0xa8   : > { %v526_v59 = vpop.trf.xlu0  ;;  %578 = vst [vmem:[%s1024_s27 + $0x38] sm:$0xff] %v558_v58 }
  0xa9   : > { %577 = vst [vmem:[%s1024_s27 + $0x30] sm:$0xff] %v526_v59 }
  0xab   : > { %v559_v60 = vpop.trf.xlu1 }
  0xac   : > { %v527_v61 = vpop.trf.xlu0  ;;  %580 = vst [vmem:[%s1024_s27 + $0x48] sm:$0xff] %v559_v60 }
  0xad   : > { %579 = vst [vmem:[%s1024_s27 + $0x40] sm:$0xff] %v527_v61 }
  0xaf   : > { %v560_v62 = vpop.trf.xlu1 }
  0xb0   : > { %v528_v63 = vpop.trf.xlu0  ;;  %582 = vst [vmem:[%s1024_s27 + $0x58] sm:$0xff] %v560_v62 }
  0xb1   : > { %581 = vst [vmem:[%s1024_s27 + $0x50] sm:$0xff] %v528_v63 }
  0xb3   : > { %v561_v1 = vpop.trf.xlu1 }
  0xb4   : > { %v529_v2 = vpop.trf.xlu0  ;;  %584 = vst [vmem:[%s1024_s27 + $0x68] sm:$0xff] %v561_v1 }
  0xb5   : > { %583 = vst [vmem:[%s1024_s27 + $0x60] sm:$0xff] %v529_v2 }
  0xb7   : > { %v562_v3 = vpop.trf.xlu1 }
  0xb8   : > { %v530_v4 = vpop.trf.xlu0  ;;  %586 = vst [vmem:[%s1024_s27 + $0x78] sm:$0xff] %v562_v3 }
  0xb9   : > { %585 = vst [vmem:[%s1024_s27 + $0x70] sm:$0xff] %v530_v4 }
  0xbb   : > { %v563_v5 = vpop.trf.xlu1 }
  0xbc   : > { %v531_v6 = vpop.trf.xlu0  ;;  %588 = vst [vmem:[%s1024_s27 + $0x88] sm:$0xff] %v563_v5 }
  0xbd   : > { %587 = vst [vmem:[%s1024_s27 + $0x80] sm:$0xff] %v531_v6 }
  0xbf   : > { %v564_v7 = vpop.trf.xlu1 }
  0xc0   : > { %v532_v8 = vpop.trf.xlu0  ;;  %590 = vst [vmem:[%s1024_s27 + $0x98] sm:$0xff] %v564_v7 }
  0xc1   : > { %589 = vst [vmem:[%s1024_s27 + $0x90] sm:$0xff] %v532_v8 }
  0xc3   : > { %v565_v10 = vpop.trf.xlu1 }
  0xc4   : > { %v533_v11 = vpop.trf.xlu0  ;;  %592 = vst [vmem:[%s1024_s27 + $0xa8] sm:$0xff] %v565_v10 }
  0xc5   : > { %591 = vst [vmem:[%s1024_s27 + $0xa0] sm:$0xff] %v533_v11 }
  0xc7   : > { %v566_v12 = vpop.trf.xlu1 }
  0xc8   : > { %v534_v13 = vpop.trf.xlu0  ;;  %594 = vst [vmem:[%s1024_s27 + $0xb8] sm:$0xff] %v566_v12 }
  0xc9   : > { %593 = vst [vmem:[%s1024_s27 + $0xb0] sm:$0xff] %v534_v13 }
  0xcb   : > { %v567_v14 = vpop.trf.xlu1 }
  0xcc   : > { %v535_v15 = vpop.trf.xlu0  ;;  %596 = vst [vmem:[%s1024_s27 + $0xc8] sm:$0xff] %v567_v14 }
  0xcd   : > { %595 = vst [vmem:[%s1024_s27 + $0xc0] sm:$0xff] %v535_v15 }
  0xcf   : > { %v568_v16 = vpop.trf.xlu1 }
  0xd0   : > { %v536_v17 = vpop.trf.xlu0  ;;  %598 = vst [vmem:[%s1024_s27 + $0xd8] sm:$0xff] %v568_v16 }
  0xd1   : > { %597 = vst [vmem:[%s1024_s27 + $0xd0] sm:$0xff] %v536_v17 }
  0xd3   : > { %v569_v18 = vpop.trf.xlu1 }
  0xd4   : > { %v537_v19 = vpop.trf.xlu0  ;;  %600 = vst [vmem:[%s1024_s27 + $0xe8] sm:$0xff] %v569_v18 }
  0xd5   : > { %599 = vst [vmem:[%s1024_s27 + $0xe0] sm:$0xff] %v537_v19 }
  0xd7   : > { %v570_v20 = vpop.trf.xlu1 }
  0xd8   : > { %v538_v21 = vpop.trf.xlu0  ;;  %602 = vst [vmem:[%s1024_s27 + $0xf8] sm:$0xff] %v570_v20 }
  0xd9   : > { %601 = vst [vmem:[%s1024_s27 + $0xf0] sm:$0xff] %v538_v21 }
  0xda PF: > { %s13_s14 = sadd.s32 1, %s881_s14   ;;  %s1071_s12 = smov %s877_s13 }
  0xdb   : > { %p10_p5 = scmp.ge.s32.totalorder %s13_s14, 4   ;;  %s1072_s13 = smov %s1074_s15 }
  0xdd   :  { %12 = sbr.rel (!%p10_p5) target bundleno = 2 (0x2), region = 68 }

// kernel: convolutional_forward.2
= control target key start
LH: loop header
LB: loop body
LE: loop exit
PB: predicated region body
PF: predicated region fallthrough
CT: control target
= control target key end

     0   :  { %s1737_s15 = smov 0   ;;  %s1739_s16 = smov 0   ;;  %s1929_s0 = inlined_call_operand.vmem [shape: bf16[2,256,128], index: 0, kind: input, shape index: {}]   ;;  %s1930_s1 = inlined_call_operand.vmem [shape: bf16[128,128], index: 1, kind: input, shape index: {}]   ;;  %s1931_s2 = inlined_call_operand.vmem [shape: bf16[2,256,128], index: 2, kind: output, shape index: {0}]   ;;  %s1932_s3 = inlined_call_operand.vmem [shape: f32[2,1,1,128], index: 3, kind: output, shape index: {1}]   ;;  %s1933_s4 = inlined_call_operand.vmem [shape: f32[2,1,1,128], index: 4, kind: output, shape index: {2}]  }
   0x1   :  { %s1741_s17 = smov 0  }
   0x2 LB: > { %s41_s18 = sadd.s32 1, %s1706_s16  ;;  %p1360_p0 = scmp.ge.s32.totalorder %s1710_s17, 1  ;;  %s1710_s17 = sphi %s1741_s17, %s15_s17   ;;  %s1706_s16 = sphi %s1739_s16, %s1935_s16   ;;  %s1702_s15 = sphi %s1737_s15, %s1934_s15  }
   0x3   : > { %p43_p1 = scmp.ge.s32.totalorder %s41_s18, 2  ;;  %p233_p2 = scmp.lt.s32.totalorder %s1710_s17, 3 }
   0x5   : > { %s1937_s18 = smov (%p43_p1, %s41_s18), 0  ;;  %p234_p3 = pnand %p1360_p0, %p233_p2 }
   0x6   : > { %v1664_v0 = vld [vmem:[%s1930_s1] sm:$0xff] (!%p234_p3)   ;;  %p300_p4 = scmp.lt.s32.totalorder (!%p234_p3), %s1702_s15, 1  ;;  %v1665_v1 = vld [vmem:[%s1930_s1 + $0x8] sm:$0xff] (!%p234_p3)   ;;  %v1666_v2 = vld [vmem:[%s1930_s1 + $0x10] sm:$0xff] (!%p234_p3)  }
   0x7   : > { %237 = sbr.rel (%p234_p3) target bundleno = 331 (0x14b), region = 28  ;;  %1576 = vmatprep.subr.bf16.mxu0 (!%p234_p3), %v1664_v0  ;;  %1624 = vmatprep.subr.bf16.mxu1 (!%p234_p3), %v1664_v0  ;;  %v1667_v3 = vld [vmem:[%s1930_s1 + $0x18] sm:$0xff] (!%p234_p3)   ;;  %v1668_v5 = vld [vmem:[%s1930_s1 + $0x20] sm:$0xff] (!%p234_p3)   ;;  %v1669_v6 = vld [vmem:[%s1930_s1 + $0x28] sm:$0xff] (!%p234_p3)  }
   0x8   : > { %1577 = vmatpush3.bf16.msra.mxu0 (!%p234_p3), %v1664_v0  ;;  %1632 = vmatpush3.bf16.msra.mxu1 (!%p234_p3), %v1664_v0  ;;  %v1670_v8 = vld [vmem:[%s1930_s1 + $0x30] sm:$0xff] (!%p234_p3)   ;;  %v1671_v9 = vld [vmem:[%s1930_s1 + $0x38] sm:$0xff] (!%p234_p3)  }
   0x9   : > { %1578 = vmatprep.subr.bf16.mxu0 (!%p234_p3), %v1665_v1  ;;  %1625 = vmatprep.subr.bf16.mxu1 (!%p234_p3), %v1665_v1 }
   0xc   : > { %1579 = vmatpush3.bf16.msra.mxu0 (!%p234_p3), %v1665_v1  ;;  %1633 = vmatpush3.bf16.msra.mxu1 (!%p234_p3), %v1665_v1 }
   0xd   : > { %1580 = vmatprep.subr.bf16.mxu0 (!%p234_p3), %v1666_v2  ;;  %1626 = vmatprep.subr.bf16.mxu1 (!%p234_p3), %v1666_v2 }
   0xe   : > { %s1939_s15 = smov (!%p300_p4, %s1702_s15), 1 }
   0xf   : > { %s1423_s25 = sshll.u32 %s1939_s15, 7  ;;  %s342_s22 = scalar_lea.vmem %s1932_s3, %s1939_s15 }
  0x10   : > { %s1772_s28 = scalar_lea.vmem %s1929_s0, %s1423_s25  ;;  %1581 = vmatpush3.bf16.msra.mxu0 %v1666_v2  ;;  %1634 = vmatpush3.bf16.msra.mxu1 %v1666_v2  ;;  %s1814_s19 = scalar_lea.vmem %s1931_s2, %s1423_s25 }
  0x11   : > { %v1672_v4 = vld [vmem:[%s1772_s28] sm:$0xff]   ;;  %1582 = vmatprep.subr.bf16.mxu0 %v1667_v3  ;;  %1627 = vmatprep.subr.bf16.mxu1 %v1667_v3  ;;  %v1673_v10 = vld [vmem:[%s1772_s28 + $0x8] sm:$0xff]   ;;  %v1674_v12 = vld [vmem:[%s1772_s28 + $0x10] sm:$0xff]   ;;  %s351_s25 = scalar_lea.vmem %s1933_s4, %s1939_s15 }
  0x12   : > { %1592 = vmatprep.mubr.bf16.mxu0 %v1672_v4  ;;  %v1680_v7 = vld [vmem:[%s1772_s28 + $0x40] sm:$0xff]   ;;  %v1681_v11 = vld [vmem:[%s1772_s28 + $0x48] sm:$0xff]   ;;  %v1682_v13 = vld [vmem:[%s1772_s28 + $0x50] sm:$0xff]  }
  0x13   : > { %1608 = vmatprep.mubr.bf16.mxu1 %v1680_v7  ;;  %v1675_v14 = vld [vmem:[%s1772_s28 + $0x18] sm:$0xff]   ;;  %v1676_v16 = vld [vmem:[%s1772_s28 + $0x20] sm:$0xff]   ;;  %v1677_v18 = vld [vmem:[%s1772_s28 + $0x28] sm:$0xff]  }
  0x14   : > { %1583 = vmatpush3.bf16.msra.mxu0 %v1667_v3  ;;  %1635 = vmatpush3.bf16.msra.mxu1 %v1667_v3  ;;  %v1683_v15 = vld [vmem:[%s1772_s28 + $0x58] sm:$0xff]   ;;  %v1684_v17 = vld [vmem:[%s1772_s28 + $0x60] sm:$0xff]   ;;  %v1685_v19 = vld [vmem:[%s1772_s28 + $0x68] sm:$0xff]  }
  0x15   : > { %1584 = vmatprep.subr.bf16.mxu0 %v1668_v5  ;;  %1628 = vmatprep.subr.bf16.mxu1 %v1668_v5  ;;  %v1678_v20 = vld [vmem:[%s1772_s28 + $0x30] sm:$0xff]   ;;  %v1679_v22 = vld [vmem:[%s1772_s28 + $0x38] sm:$0xff]  }
  0x16   : > { %v1686_v21 = vld [vmem:[%s1772_s28 + $0x70] sm:$0xff]   ;;  %v1687_v23 = vld [vmem:[%s1772_s28 + $0x78] sm:$0xff]  }
  0x18   : > { %1585 = vmatpush3.bf16.msra.mxu0 %v1668_v5  ;;  %1636 = vmatpush3.bf16.msra.mxu1 %v1668_v5 }
  0x19   : > { %1586 = vmatprep.subr.bf16.mxu0 %v1669_v6  ;;  %1629 = vmatprep.subr.bf16.mxu1 %v1669_v6 }
  0x1c   : > { %1587 = vmatpush3.bf16.msra.mxu0 %v1669_v6  ;;  %1637 = vmatpush3.bf16.msra.mxu1 %v1669_v6 }
  0x1d   : > { %1588 = vmatprep.subr.bf16.mxu0 %v1670_v8  ;;  %1630 = vmatprep.subr.bf16.mxu1 %v1670_v8 }
  0x20   : > { %1589 = vmatpush3.bf16.msra.mxu0 %v1670_v8  ;;  %1638 = vmatpush3.bf16.msra.mxu1 %v1670_v8 }
  0x21   : > { %1590 = vmatprep.subr.bf16.mxu0 %v1671_v9  ;;  %1631 = vmatprep.subr.bf16.mxu1 %v1671_v9 }
  0x24   : > { %1591 = vmatpush3.bf16.msra.mxu0 %v1671_v9  ;;  %1639 = vmatpush3.bf16.msra.mxu1 %v1671_v9 }
  0x27   : > { %1593 = vmatmul.mubr.bf16.vlgmr.msra.gmra.mrb[0].mxu0 %v1673_v10  ;;  %1609 = vmatmul.mubr.bf16.vlgmr.msra.gmra.mrb[0].mxu1 %v1681_v11 }
  0x28   : > { %1596 = vmatprep.mubr.bf16.mxu0 %v1674_v12  ;;  %1612 = vmatprep.mubr.bf16.mxu1 %v1682_v13 }
  0x2f   : > { %1597 = vmatmul.mubr.bf16.gmra.mrb[4].mxu0 %v1675_v14  ;;  %1613 = vmatmul.mubr.bf16.gmra.mrb[4].mxu1 %v1683_v15 }
  0x30   : > { %1600 = vmatprep.mubr.bf16.mxu0 %v1676_v16  ;;  %1616 = vmatprep.mubr.bf16.mxu1 %v1684_v17 }
  0x37   : > { %1601 = vmatmul.mubr.bf16.gmra.mrb[8].mxu0 %v1677_v18  ;;  %1617 = vmatmul.mubr.bf16.gmra.mrb[8].mxu1 %v1685_v19 }
  0x38   : > { %1604 = vmatprep.mubr.bf16.mxu0 %v1678_v20  ;;  %1620 = vmatprep.mubr.bf16.mxu1 %v1686_v21 }
  0x3f   : > { %1605 = vmatmul.mubr.bf16.gmra.mrb[12].mxu0 %v1679_v22  ;;  %1621 = vmatmul.mubr.bf16.gmra.mrb[12].mxu1 %v1687_v23 }
  0xfa   : > { %v1594_v24 = vpop.f32.mrb[0].mxu0  ;;  %v1805_v25 = vpop.f32.mrb[0].mxu1 }
  0xfb   : > { %v647_v26 = vpop.f32.mrb[1].mxu0  ;;  %v1807_v27 = vpop.f32.mrb[1].mxu1  ;;  %v1073_v39 = vmul.f32 %v1594_v24, %v1594_v24 }
  0xfc   : > { %v1595_v28 = vpop.f32.mrb[2].mxu0  ;;  %v1816_v29 = vpop.f32.mrb[2].mxu1  ;;  %v1071_v30 = vmul.f32 %v647_v26, %v647_v26 }
  0xfd   : > { %v1465_v31 = vpack.c.bf16 %v1595_v28, %v1594_v24  ;;  %v650_v32 = vpop.f32.mrb[3].mxu0  ;;  %v1505_v33 = vpack.c.bf16 %v1816_v29, %v1805_v25  ;;  %v1820_v34 = vpop.f32.mrb[3].mxu1  ;;  %v1074_v42 = vmul.f32 %v1595_v28, %v1595_v28 }
  0xfe   : > { %v1460_v35 = vpack.c.bf16 %v650_v32, %v647_v26  ;;  %v1033_v36 = vadd.f32 %v650_v32, %v647_v26  ;;  %v1072_v37 = vmul.f32 %v650_v32, %v650_v32  ;;  %v1500_v38 = vpack.c.bf16 %v1820_v34, %v1807_v27 }
  0xff   : > { %1537 = vst [vmem:[%s1814_s19 + $0x8] sm:$0xff] %v1465_v31   ;;  %1545 = vst [vmem:[%s1814_s19 + $0x48] sm:$0xff] %v1505_v33  }
 0x100   : > { %1461 = vst [vmem:[%s1814_s19] sm:$0xff] %v1460_v35   ;;  %v1034_v40 = vadd.f32 %v1594_v24, %v1033_v36  ;;  %v1103_v41 = vadd.f32 %v1072_v37, %v1071_v30  ;;  %1544 = vst [vmem:[%s1814_s19 + $0x40] sm:$0xff] %v1500_v38  }
 0x102   : > { %v1104_v43 = vadd.f32 %v1103_v41, %v1073_v39  ;;  %v1598_v44 = vpop.f32.mrb[4].mxu0  ;;  %v1035_v45 = vadd.f32 %v1595_v28, %v1034_v40  ;;  %v1828_v46 = vpop.f32.mrb[4].mxu1 }
 0x103   : > { %v663_v47 = vpop.f32.mrb[5].mxu0  ;;  %v1830_v48 = vpop.f32.mrb[5].mxu1  ;;  %v1077_v63 = vmul.f32 %v1598_v44, %v1598_v44 }
 0x104   : > { %v1036_v49 = vadd.f32 %v1035_v45, %v663_v47  ;;  %v1075_v50 = vmul.f32 %v663_v47, %v663_v47  ;;  %v1105_v51 = vadd.f32 %v1104_v43, %v1074_v42  ;;  %v1599_v52 = vpop.f32.mrb[6].mxu0  ;;  %v1832_v53 = vpop.f32.mrb[6].mxu1 }
 0x105   : > { %v1475_v54 = vpack.c.bf16 %v1599_v52, %v1598_v44  ;;  %v666_v55 = vpop.f32.mrb[7].mxu0  ;;  %v1515_v56 = vpack.c.bf16 %v1832_v53, %v1828_v46  ;;  %v1836_v57 = vpop.f32.mrb[7].mxu1  ;;  %v1078_v2 = vmul.f32 %v1599_v52, %v1599_v52 }
 0x106   : > { %v1106_v58 = vadd.f32 %v1105_v51, %v1075_v50  ;;  %v1470_v59 = vpack.c.bf16 %v666_v55, %v663_v47  ;;  %v1037_v60 = vadd.f32 %v1036_v49, %v666_v55  ;;  %v1076_v61 = vmul.f32 %v666_v55, %v666_v55 }
 0x107   : > { %1539 = vst [vmem:[%s1814_s19 + $0x18] sm:$0xff] %v1475_v54   ;;  %1547 = vst [vmem:[%s1814_s19 + $0x58] sm:$0xff] %v1515_v56   ;;  %v1510_v62 = vpack.c.bf16 %v1836_v57, %v1830_v48 }
 0x108   : > { %1538 = vst [vmem:[%s1814_s19 + $0x10] sm:$0xff] %v1470_v59   ;;  %v1038_v0 = vadd.f32 %v1598_v44, %v1037_v60  ;;  %v1107_v1 = vadd.f32 %v1106_v58, %v1076_v61  ;;  %v1087_v61 = vmul.f32 %v1807_v27, %v1807_v27 }
 0x109   : > { %1546 = vst [vmem:[%s1814_s19 + $0x50] sm:$0xff] %v1510_v62  }
 0x10a   : > { %v1108_v3 = vadd.f32 %v1107_v1, %v1077_v63  ;;  %v1602_v4 = vpop.f32.mrb[8].mxu0  ;;  %v1039_v5 = vadd.f32 %v1599_v52, %v1038_v0  ;;  %v1844_v6 = vpop.f32.mrb[8].mxu1 }
 0x10b   : > { %v679_v7 = vpop.f32.mrb[9].mxu0  ;;  %v1846_v8 = vpop.f32.mrb[9].mxu1  ;;  %v1081_v23 = vmul.f32 %v1602_v4, %v1602_v4 }
 0x10c   : > { %v1040_v9 = vadd.f32 %v1039_v5, %v679_v7  ;;  %v1079_v10 = vmul.f32 %v679_v7, %v679_v7  ;;  %v1109_v11 = vadd.f32 %v1108_v3, %v1078_v2  ;;  %v1603_v12 = vpop.f32.mrb[10].mxu0  ;;  %v1848_v13 = vpop.f32.mrb[10].mxu1  ;;  %v1088_v2 = vmul.f32 %v1820_v34, %v1820_v34 }
 0x10d   : > { %v1485_v14 = vpack.c.bf16 %v1603_v12, %v1602_v4  ;;  %v682_v15 = vpop.f32.mrb[11].mxu0  ;;  %v1525_v16 = vpack.c.bf16 %v1848_v13, %v1844_v6  ;;  %v1852_v17 = vpop.f32.mrb[11].mxu1  ;;  %v1082_v28 = vmul.f32 %v1603_v12, %v1603_v12  ;;  %v1089_v3 = vmul.f32 %v1805_v25, %v1805_v25 }
 0x10e   : > { %v1110_v18 = vadd.f32 %v1109_v11, %v1079_v10  ;;  %v1480_v19 = vpack.c.bf16 %v682_v15, %v679_v7  ;;  %v1041_v20 = vadd.f32 %v1040_v9, %v682_v15  ;;  %v1080_v21 = vmul.f32 %v682_v15, %v682_v15 }
 0x10f   : > { %1541 = vst [vmem:[%s1814_s19 + $0x28] sm:$0xff] %v1485_v14   ;;  %1549 = vst [vmem:[%s1814_s19 + $0x68] sm:$0xff] %v1525_v16   ;;  %v1520_v22 = vpack.c.bf16 %v1852_v17, %v1846_v8  ;;  %v1090_v7 = vmul.f32 %v1816_v29, %v1816_v29  ;;  %v1092_v15 = vmul.f32 %v1836_v57, %v1836_v57 }
 0x110   : > { %1540 = vst [vmem:[%s1814_s19 + $0x20] sm:$0xff] %v1480_v19   ;;  %v1042_v24 = vadd.f32 %v1602_v4, %v1041_v20  ;;  %v1111_v26 = vadd.f32 %v1110_v18, %v1080_v21 }
 0x111   : > { %1548 = vst [vmem:[%s1814_s19 + $0x60] sm:$0xff] %v1520_v22  }
 0x112   : > { %v1112_v30 = vadd.f32 %v1111_v26, %v1081_v23  ;;  %v1606_v31 = vpop.f32.mrb[12].mxu0  ;;  %v1043_v32 = vadd.f32 %v1603_v12, %v1042_v24  ;;  %v1860_v33 = vpop.f32.mrb[12].mxu1  ;;  %v1096_v24 = vmul.f32 %v1852_v17, %v1852_v17 }
 0x113   : > { %v695_v35 = vpop.f32.mrb[13].mxu0  ;;  %v759_v36 = vpop.f32.mrb[13].mxu1  ;;  %v1085_v54 = vmul.f32 %v1606_v31, %v1606_v31 }
 0x114   : > { %v1044_v37 = vadd.f32 %v1043_v32, %v695_v35  ;;  %v1083_v38 = vmul.f32 %v695_v35, %v695_v35  ;;  %v1113_v39 = vadd.f32 %v1112_v30, %v1082_v28  ;;  %v1607_v40 = vpop.f32.mrb[14].mxu0  ;;  %v1862_v41 = vpop.f32.mrb[14].mxu1 }
 0x115   : > { %v1495_v42 = vpack.c.bf16 %v1607_v40, %v1606_v31  ;;  %v698_v43 = vpop.f32.mrb[15].mxu0  ;;  %v1535_v44 = vpack.c.bf16 %v1862_v41, %v1860_v33  ;;  %v762_v45 = vpop.f32.mrb[15].mxu1  ;;  %v1086_v58 = vmul.f32 %v1607_v40, %v1607_v40 }
 0x116   : > { %v1114_v47 = vadd.f32 %v1113_v39, %v1083_v38  ;;  %v1490_v49 = vpack.c.bf16 %v698_v43, %v695_v35  ;;  %v1045_v50 = vadd.f32 %v1044_v37, %v698_v43  ;;  %v1084_v51 = vmul.f32 %v698_v43, %v698_v43 }
 0x117   : > { %1543 = vst [vmem:[%s1814_s19 + $0x38] sm:$0xff] %v1495_v42   ;;  %1551 = vst [vmem:[%s1814_s19 + $0x78] sm:$0xff] %v1535_v44   ;;  %v1530_v52 = vpack.c.bf16 %v762_v45, %v759_v36  ;;  %v1100_v39 = vmul.f32 %v762_v45, %v762_v45  ;;  %v1102_v42 = vmul.f32 %v1862_v41, %v1862_v41 }
 0x118   : > { %1542 = vst [vmem:[%s1814_s19 + $0x30] sm:$0xff] %v1490_v49   ;;  %v1046_v55 = vadd.f32 %v1606_v31, %v1045_v50  ;;  %v1115_v56 = vadd.f32 %v1114_v47, %v1084_v51 }
 0x119   : > { %1550 = vst [vmem:[%s1814_s19 + $0x70] sm:$0xff] %v1530_v52  }
 0x11a   : > { %v1116_v59 = vadd.f32 %v1115_v56, %v1085_v54  ;;  %v1047_v60 = vadd.f32 %v1607_v40, %v1046_v55 }
 0x11c   : > { %v1048_v62 = vadd.f32 %v1047_v60, %v1807_v27  ;;  %v1117_v63 = vadd.f32 %v1116_v59, %v1086_v58  ;;  %v1091_v27 = vmul.f32 %v1830_v48, %v1830_v48 }
 0x11e   : > { %v1118_v0 = vadd.f32 %v1117_v63, %v1087_v61  ;;  %v1049_v1 = vadd.f32 %v1048_v62, %v1820_v34 }
 0x120   : > { %v1050_v4 = vadd.f32 %v1805_v25, %v1049_v1  ;;  %v1119_v5 = vadd.f32 %v1118_v0, %v1088_v2  ;;  %v1093_v25 = vmul.f32 %v1828_v46, %v1828_v46 }
 0x122   : > { %v1120_v9 = vadd.f32 %v1119_v5, %v1089_v3  ;;  %v1051_v10 = vadd.f32 %v1816_v29, %v1050_v4  ;;  %v1094_v29 = vmul.f32 %v1832_v53, %v1832_v53 }
 0x124   : > { %v1052_v11 = vadd.f32 %v1051_v10, %v1830_v48  ;;  %v1121_v12 = vadd.f32 %v1120_v9, %v1090_v7  ;;  %v1095_v48 = vmul.f32 %v1846_v8, %v1846_v8 }
 0x126   : > { %v1122_v14 = vadd.f32 %v1121_v12, %v1091_v27  ;;  %v1053_v34 = vadd.f32 %v1052_v11, %v1836_v57 }
 0x128   : > { %v1054_v16 = vadd.f32 %v1828_v46, %v1053_v34  ;;  %v1123_v18 = vadd.f32 %v1122_v14, %v1092_v15  ;;  %v1097_v46 = vmul.f32 %v1844_v6, %v1844_v6 }
 0x12a   : > { %v1124_v19 = vadd.f32 %v1123_v18, %v1093_v25  ;;  %v1055_v20 = vadd.f32 %v1832_v53, %v1054_v16  ;;  %v1098_v53 = vmul.f32 %v1848_v13, %v1848_v13 }
 0x12c   : > { %v1056_v21 = vadd.f32 %v1055_v20, %v1846_v8  ;;  %v1125_v22 = vadd.f32 %v1124_v19, %v1094_v29  ;;  %v1099_v8 = vmul.f32 %v759_v36, %v759_v36 }
 0x12e   : > { %v1126_v23 = vadd.f32 %v1125_v22, %v1095_v48  ;;  %v1057_v57 = vadd.f32 %v1056_v21, %v1852_v17  ;;  %v1101_v17 = vmul.f32 %v1860_v33, %v1860_v33 }
 0x130   : > { %v1058_v26 = vadd.f32 %v1844_v6, %v1057_v57  ;;  %v1127_v28 = vadd.f32 %v1126_v23, %v1096_v24 }
 0x132   : > { %v1128_v30 = vadd.f32 %v1127_v28, %v1097_v46  ;;  %v1059_v31 = vadd.f32 %v1848_v13, %v1058_v26 }
 0x134   : > { %v1060_v32 = vadd.f32 %v1059_v31, %v759_v36  ;;  %v1129_v35 = vadd.f32 %v1128_v30, %v1098_v53 }
 0x136   : > { %v1130_v37 = vadd.f32 %v1129_v35, %v1099_v8  ;;  %v1061_v38 = vadd.f32 %v1060_v32, %v762_v45 }
 0x138   : > { %v1062_v40 = vadd.f32 %v1860_v33, %v1061_v38  ;;  %v1131_v6 = vadd.f32 %v1130_v37, %v1100_v39 }
 0x13a   : > { %v1063_v43 = vadd.f32 %v1862_v41, %v1062_v40  ;;  %v1132_v13 = vadd.f32 %v1131_v6, %v1101_v17 }
 0x13c   : > { %v1064_v44 = vrot.slane %v1063_v43, 4  ;;  %v1133_v36 = vadd.f32 %v1132_v13, %v1102_v42 }
 0x13e   : > { %v1065_v47 = vadd.f32 %v1064_v44, %v1063_v43  ;;  %v1134_v49 = vrot.slane %v1133_v36, 4 }
 0x140   : > { %v1066_v50 = vrot.slane %v1065_v47, 2  ;;  %v1135_v45 = vadd.f32 %v1134_v49, %v1133_v36 }
 0x142   : > { %v1067_v51 = vadd.f32 %v1066_v50, %v1065_v47  ;;  %v1136_v52 = vrot.slane %v1135_v45, 2 }
 0x144   : > { %v1068_v54 = vrot.slane %v1067_v51, 1  ;;  %v1137_v55 = vadd.f32 %v1136_v52, %v1135_v45 }
 0x146   : > { %v1069_v33 = vadd.f32 %v1068_v54, %v1067_v51  ;;  %v1138_v56 = vrot.slane %v1137_v55, 1 }
 0x148   : > { %1070 = vst [vmem:[%s342_s22] sm:$0x1] %v1069_v33  ;;  %v1139_v41 = vadd.f32 %v1138_v56, %v1137_v55 }
 0x14a   : > { %1140 = vst [vmem:[%s351_s25] sm:$0x1] %v1139_v41 }
 0x14b PF: > { %s15_s17 = sadd.s32 1, %s1710_s17   ;;  %s1934_s15 = smov %s1706_s16 }
 0x14c   : > { %p12_p5 = scmp.ge.s32.totalorder %s15_s17, 4   ;;  %s1935_s16 = smov %s1937_s18 }
 0x14e   :  { %14 = sbr.rel (!%p12_p5) target bundleno = 2 (0x2), region = 93 }

</bundles_post_ra>
